<compile_context>
chip_gen: v7x
topology: tpu7x:2x2x1
jax: 0.10.0
libtpu: 0.0.40
codegen_flags: <defaults>
</compile_context>

<pallas_src>
import functools

import jax
import jax.numpy as jnp
from jax.experimental import pallas as pl
from jax.experimental.pallas import tpu as pltpu

EPS = 1e-10
_INV_LN2 = 1.4426950408889634  # log2(e)
_MIB = 1024 * 1024


# ----------------------------- 2D kernel -------------------------------------
def hloss2d_kernel(x_ref, out_ref, *, n_rows, tn):
    """Per row-block partials written into an (8, 128) tile (sublane 0 only):
         lane 0: sum of p*log2(p) over rows with any nonzero entry ("exist" rows)
         lane 1: sum of p*log2(p) over all-zero rows
         lane 2: number of "exist" rows
    """
    i = pl.program_id(0)

    x = x_ref[...].astype(jnp.float32)                                   # (tn, C)

    # Rows past the true N (partial last block) hold undefined data; mask at
    # row granularity with selects so NaN/Inf from garbage cannot propagate.
    row_ids = i * tn + jax.lax.broadcasted_iota(jnp.int32, (tn, 1), 0)   # (tn, 1)
    valid = row_ids < n_rows                                             # (tn, 1)

    # exist[i] = any(x[i, :] != 0), from reductions we need anyway (exact).
    mx = jnp.max(x, axis=-1, keepdims=True)                              # (tn, 1)
    mn = jnp.min(x, axis=-1, keepdims=True)                              # (tn, 1)
    exist = jnp.where(
        valid,
        jnp.logical_or(mx != 0.0, mn != 0.0).astype(jnp.float32),
        0.0,
    )                                                                    # (tn, 1)

    # Row-wise sum_j p*log2(p) without per-element log2/divide.
    xm = x - mx
    e = jnp.exp(xm)
    s = jnp.sum(e, axis=-1, keepdims=True)                               # (tn, 1)
    t = jnp.sum(e * xm, axis=-1, keepdims=True)                          # (tn, 1)
    row_b = _INV_LN2 * (t / s - jnp.log(s))                              # (tn, 1)
    row_b = jnp.where(valid, row_b, 0.0)                                 # select, not multiply

    se = jnp.sum(exist * row_b, keepdims=True)                           # (1, 1)
    sn = jnp.sum((1.0 - exist) * row_b, keepdims=True)                   # (1, 1)
    ce = jnp.sum(exist, keepdims=True)                                   # (1, 1)

    lane = jax.lax.broadcasted_iota(jnp.int32, (8, 128), 1)
    sub = jax.lax.broadcasted_iota(jnp.int32, (8, 128), 0)
    row0 = jnp.where(lane == 0, se,
           jnp.where(lane == 1, sn,
           jnp.where(lane == 2, ce, 0.0)))
    out_ref[...] = jnp.where(sub == 0, row0, 0.0)


def _vmem_budgets():
    """(working_set_budget_bytes, vmem_limit_bytes); conservative for v7x."""
    phys = 0
    try:
        phys = int(pltpu.get_tpu_info().vmem_capacity_bytes)
    except Exception:
        phys = 0
    if phys >= 96 * _MIB:
        # v5e / v6e: 128 MiB physical VMEM per TensorCore.
        return 48 * _MIB, 96 * _MIB
    # v7x (64 MiB physical) or unknown generation: stay conservative.
    return 24 * _MIB, 48 * _MIB


def _choose_block_rows(c, in_itemsize, working_set_budget):
    # Per-element VMEM cost: double-buffered input in its native dtype plus
    # ~3 full-tile f32 intermediates (x/xm, e, e*xm) produced in-kernel.
    per_elem = 2 * in_itemsize + 3 * 4
    tn = working_set_budget // max(1, c * per_elem)
    tn = int(max(8, (tn // 8) * 8))
    return tn


def _hloss_2d(x, max_block_rows=None):
    n, c = x.shape
    itemsize = jnp.dtype(x.dtype).itemsize
    ws_budget, vmem_limit = _vmem_budgets()
    tn = _choose_block_rows(c, itemsize, ws_budget)
    if max_block_rows is not None:  # test hook: force multi-block path on small N
        tn = max(8, min(tn, (int(max_block_rows) // 8) * 8))

    if n <= 8:
        block_rows, grid_n = n, 1          # single tiny block == full array dims
    elif n <= tn:
        # Split into (at least) two blocks so both v7x TensorCores get work.
        block_rows = max(8, ((pl.cdiv(n, 2) + 7) // 8) * 8)
        grid_n = pl.cdiv(n, block_rows)
    else:
        block_rows, grid_n = tn, pl.cdiv(n, tn)

    kernel = functools.partial(hloss2d_kernel, n_rows=n, tn=block_rows)

    cost = pl.CostEstimate(
        flops=int(6 * n * c),
        transcendentals=int(n * c),
        bytes_accessed=int(n * c * itemsize + grid_n * 8 * 128 * 4),
    )

    partials = pl.pallas_call(
        kernel,
        out_shape=jax.ShapeDtypeStruct((grid_n * 8, 128), jnp.float32),
        grid_spec=pltpu.PrefetchScalarGridSpec(
            num_scalar_prefetch=0,
            grid=(grid_n,),
            in_specs=[pl.BlockSpec((block_rows, c), lambda i: (i, 0))],
            out_specs=pl.BlockSpec((8, 128), lambda i: (i, 0)),
        ),
        compiler_params=pltpu.CompilerParams(
            dimension_semantics=("parallel",),
            vmem_limit_bytes=vmem_limit,
        ),
        cost_estimate=cost,
    )(x)

    totals = jnp.sum(partials, axis=0)     # (128,)
    se, sn, ce = totals[0], totals[1], totals[2]
    cf = jnp.float32(c)

    # b_mean over "exist" rows; replacing those rows with b_mean then summing
    # contributes ce * C * b_mean to the total.
    b_mean = jnp.where(ce > 0.0, se / jnp.maximum(ce * cf, 1.0), 0.0)
    total = sn + ce * cf * b_mean
    return -total


# ----------------------------- 1D path (plain JAX) ---------------------------
def _hloss_1d(x):
    # A single (1, C) row is launch-overhead dominated; no Pallas needed.
    x = x.astype(jnp.float32)
    any_nz = jnp.any(x != 0)
    p = jax.nn.softmax(x, axis=0)
    b = p * jnp.log2(p + EPS)              # keep EPS: matches torch 1D branch
    return jnp.where(any_nz, -jnp.sum(b), jnp.float32(0.0))


def hloss(x, max_block_rows=None):
    x = jnp.asarray(x)
    if not jnp.issubdtype(x.dtype, jnp.floating):
        x = x.astype(jnp.float32)
    if x.ndim == 1:
        return _hloss_1d(x)
    if x.ndim != 2:
        raise ValueError("HLoss kernel supports 1D or 2D inputs")
    return _hloss_2d(x, max_block_rows=max_block_rows)


# ----------------------------- reference (plain JAX) -------------------------
def hloss_ref(x):
    x = jnp.asarray(x, jnp.float32)
    if x.ndim == 1:
        p = jax.nn.softmax(x, axis=0)
        b = p * jnp.log2(p + EPS)
        return jnp.where(jnp.any(x != 0), -jnp.sum(b), 0.0)
    n, c = x.shape
    exist = jnp.any(x != 0, axis=1)
    p = jax.nn.softmax(x, axis=1)
    b = p * jnp.log2(p)
    num_exist = jnp.sum(exist.astype(jnp.float32))
    se = jnp.sum(jnp.where(exist[:, None], b, 0.0))
    b_mean = jnp.where(num_exist > 0, se / jnp.maximum(num_exist * c, 1.0), 0.0)
    b = jnp.where(exist[:, None], b_mean, b)
    return -jnp.sum(b)


if __name__ == "__main__":
    key = jax.random.PRNGKey(0)
    k1, k2, k3, k4, k5 = jax.random.split(key, 5)

    # Small 2D case with a couple of all-zero rows (single-block path).
    x = jax.random.normal(k1, (8, 32), dtype=jnp.float32)
    x = x.at[2].set(0.0).at[5].set(0.0)
    out = hloss(x)
    jax.block_until_ready(out)
    ref = hloss_ref(x)
    assert jnp.allclose(out, ref, rtol=1e-4, atol=1e-5), (float(out), float(ref))

    # Medium 2D case: exercises the "split into two blocks" (v7x megacore) path
    # with a partial last block and a non-128-multiple C.
    x_mid = jax.random.normal(k2, (20, 33), dtype=jnp.float32)
    x_mid = x_mid.at[3].set(0.0).at[19].set(0.0)
    out_mid = hloss(x_mid)
    jax.block_until_ready(out_mid)
    ref_mid = hloss_ref(x_mid)
    assert jnp.allclose(out_mid, ref_mid, rtol=1e-4, atol=1e-4), (float(out_mid), float(ref_mid))

    # Multi-block grid with a partial last block (forced small blocks for test).
    x_grid = jax.random.normal(k3, (50, 64), dtype=jnp.float32)
    x_grid = x_grid.at[0].set(0.0).at[17].set(0.0).at[49].set(0.0)
    out_grid = hloss(x_grid, max_block_rows=16)
    jax.block_until_ready(out_grid)
    ref_grid = hloss_ref(x_grid)
    assert jnp.allclose(out_grid, ref_grid, rtol=1e-4, atol=1e-4), (float(out_grid), float(ref_grid))

    # bf16 input (exercises the dtype-aware VMEM budgeting + in-VMEM f32 cast).
    x_bf = jax.random.normal(k4, (12, 48), dtype=jnp.bfloat16)
    x_bf = x_bf.at[1].set(0.0)
    out_bf = hloss(x_bf)
    jax.block_until_ready(out_bf)
    ref_bf = hloss_ref(x_bf)
    assert jnp.allclose(out_bf, ref_bf, rtol=1e-3, atol=1e-3), (float(out_bf), float(ref_bf))

    # All-zero 2D case (no "exist" rows).
    x_zero = jnp.zeros((4, 16), dtype=jnp.float32)
    out_zero = hloss(x_zero)
    jax.block_until_ready(out_zero)
    ref_zero = hloss_ref(x_zero)
    assert jnp.allclose(out_zero, ref_zero, rtol=1e-5, atol=1e-5), (float(out_zero), float(ref_zero))

    # 1D cases.
    x1 = jax.random.normal(k5, (32,), dtype=jnp.float32)
    out1 = hloss(x1)
    jax.block_until_ready(out1)
    ref1 = hloss_ref(x1)
    assert jnp.allclose(out1, ref1, rtol=1e-4, atol=1e-5), (float(out1), float(ref1))

    out1z = hloss(jnp.zeros((16,), jnp.float32))
    jax.block_until_ready(out1z)
    assert jnp.allclose(out1z, 0.0), float(out1z)

    print("KERNEL_OK")
</pallas_src>

<mosaic_0001>
module attributes {stable_mosaic.version = 11 : i64} {
  func.func @hloss2d_kernel(%arg0: i32, %arg1: memref<8x32xf32, #tpu.memory_space<vmem>>, %arg2: memref<8x128xf32, #tpu.memory_space<vmem>>) attributes {dimension_semantics = [#tpu.dimension_semantics<parallel>], iteration_bounds = array<i64: 1>, scalar_prefetch = 0 : i64, scratch_operands = 0 : i64, tpu.core_type = #tpu.core_type<tc>, window_params = [{transform_indices = @transform_0, window_bounds = array<i64: 8, 32>}, {transform_indices = @transform_1, window_bounds = array<i64: 8, 128>}]} {
    %c0 = arith.constant 0 : index
    %c0_0 = arith.constant 0 : index
    %0 = vector.load %arg1[%c0, %c0_0] : memref<8x32xf32, #tpu.memory_space<vmem>>, vector<8x32xf32>
    %c8_i32 = arith.constant 8 : i32
    %1 = arith.muli %arg0, %c8_i32 : i32
    %2 = tpu.iota {dimensions = array<i32: 0>} : vector<8x1xi32>
    %3 = vector.broadcast %1 : i32 to vector<8x1xi32>
    %4 = arith.addi %3, %2 : vector<8x1xi32>
    %c8_i32_1 = arith.constant 8 : i32
    %5 = vector.broadcast %c8_i32_1 : i32 to vector<8x1xi32>
    %6 = arith.cmpi slt, %4, %5 : vector<8x1xi32>
    %cst = arith.constant dense<0xFF800000> : vector<8xf32>
    %7 = vector.multi_reduction <maximumf>, %0, %cst [1] : vector<8x32xf32> to vector<8xf32>
    %8 = vector.shape_cast %7 : vector<8xf32> to vector<8x1xf32>
    %cst_2 = arith.constant dense<0x7F800000> : vector<8xf32>
    %9 = vector.multi_reduction <minimumf>, %0, %cst_2 [1] : vector<8x32xf32> to vector<8xf32>
    %10 = vector.shape_cast %9 : vector<8xf32> to vector<8x1xf32>
    %cst_3 = arith.constant 0.000000e+00 : f32
    %11 = vector.broadcast %cst_3 : f32 to vector<8x1xf32>
    %12 = arith.cmpf one, %8, %11 : vector<8x1xf32>
    %cst_4 = arith.constant 0.000000e+00 : f32
    %13 = vector.broadcast %cst_4 : f32 to vector<8x1xf32>
    %14 = arith.cmpf one, %10, %13 : vector<8x1xf32>
    %15 = arith.ori %12, %14 : vector<8x1xi1>
    %16 = arith.extui %15 : vector<8x1xi1> to vector<8x1xi32>
    %17 = arith.sitofp %16 : vector<8x1xi32> to vector<8x1xf32>
    %cst_5 = arith.constant 0.000000e+00 : f32
    %18 = vector.broadcast %cst_5 : f32 to vector<8x1xf32>
    %19 = arith.select %6, %17, %18 : vector<8x1xi1>, vector<8x1xf32>
    %20 = vector.broadcast %8 : vector<8x1xf32> to vector<8x32xf32>
    %21 = arith.subf %0, %20 : vector<8x32xf32>
    %22 = math.exp %21 : vector<8x32xf32>
    %cst_6 = arith.constant dense<0.000000e+00> : vector<8xf32>
    %23 = vector.multi_reduction <add>, %22, %cst_6 [1] : vector<8x32xf32> to vector<8xf32>
    %24 = vector.shape_cast %23 : vector<8xf32> to vector<8x1xf32>
    %25 = arith.mulf %22, %21 : vector<8x32xf32>
    %cst_7 = arith.constant dense<0.000000e+00> : vector<8xf32>
    %26 = vector.multi_reduction <add>, %25, %cst_7 [1] : vector<8x32xf32> to vector<8xf32>
    %27 = vector.shape_cast %26 : vector<8xf32> to vector<8x1xf32>
    %28 = arith.divf %27, %24 : vector<8x1xf32>
    %29 = math.log %24 : vector<8x1xf32>
    %30 = arith.subf %28, %29 : vector<8x1xf32>
    %cst_8 = arith.constant 1.44269502 : f32
    %31 = vector.broadcast %cst_8 : f32 to vector<8x1xf32>
    %32 = arith.mulf %31, %30 : vector<8x1xf32>
    %cst_9 = arith.constant 0.000000e+00 : f32
    %33 = vector.broadcast %cst_9 : f32 to vector<8x1xf32>
    %34 = arith.select %6, %32, %33 : vector<8x1xi1>, vector<8x1xf32>
    %35 = arith.mulf %19, %34 : vector<8x1xf32>
    %36 = vector.shape_cast %35 : vector<8x1xf32> to vector<1x8x1xf32>
    %cst_10 = arith.constant dense<0.000000e+00> : vector<1xf32>
    %37 = vector.multi_reduction <add>, %36, %cst_10 [1, 2] : vector<1x8x1xf32> to vector<1xf32>
    %38 = vector.shape_cast %37 : vector<1xf32> to vector<1x1x1xf32>
    %39 = vector.extract %38[0, 0, 0] : f32 from vector<1x1x1xf32>
    %40 = vector.broadcast %39 : f32 to vector<1x1xf32>
    %cst_11 = arith.constant 1.000000e+00 : f32
    %41 = vector.broadcast %cst_11 : f32 to vector<8x1xf32>
    %42 = arith.subf %41, %19 : vector<8x1xf32>
    %43 = arith.mulf %42, %34 : vector<8x1xf32>
    %44 = vector.shape_cast %43 : vector<8x1xf32> to vector<1x8x1xf32>
    %cst_12 = arith.constant dense<0.000000e+00> : vector<1xf32>
    %45 = vector.multi_reduction <add>, %44, %cst_12 [1, 2] : vector<1x8x1xf32> to vector<1xf32>
    %46 = vector.shape_cast %45 : vector<1xf32> to vector<1x1x1xf32>
    %47 = vector.extract %46[0, 0, 0] : f32 from vector<1x1x1xf32>
    %48 = vector.broadcast %47 : f32 to vector<1x1xf32>
    %49 = vector.shape_cast %19 : vector<8x1xf32> to vector<1x8x1xf32>
    %cst_13 = arith.constant dense<0.000000e+00> : vector<1xf32>
    %50 = vector.multi_reduction <add>, %49, %cst_13 [1, 2] : vector<1x8x1xf32> to vector<1xf32>
    %51 = vector.shape_cast %50 : vector<1xf32> to vector<1x1x1xf32>
    %52 = vector.extract %51[0, 0, 0] : f32 from vector<1x1x1xf32>
    %53 = vector.broadcast %52 : f32 to vector<1x1xf32>
    %54 = tpu.iota {dimensions = array<i32: 1>} : vector<8x128xi32>
    %55 = tpu.iota {dimensions = array<i32: 0>} : vector<8x128xi32>
    %c0_i32 = arith.constant 0 : i32
    %56 = vector.broadcast %c0_i32 : i32 to vector<8x128xi32>
    %57 = arith.cmpi eq, %54, %56 : vector<8x128xi32>
    %c1_i32 = arith.constant 1 : i32
    %58 = vector.broadcast %c1_i32 : i32 to vector<8x128xi32>
    %59 = arith.cmpi eq, %54, %58 : vector<8x128xi32>
    %c2_i32 = arith.constant 2 : i32
    %60 = vector.broadcast %c2_i32 : i32 to vector<8x128xi32>
    %61 = arith.cmpi eq, %54, %60 : vector<8x128xi32>
    %cst_14 = arith.constant 0.000000e+00 : f32
    %62 = vector.shape_cast %53 : vector<1x1xf32> to vector<1x1xf32>
    %63 = vector.broadcast %62 : vector<1x1xf32> to vector<8x128xf32>
    %64 = vector.broadcast %cst_14 : f32 to vector<8x128xf32>
    %65 = arith.select %61, %63, %64 : vector<8x128xi1>, vector<8x128xf32>
    %66 = vector.shape_cast %48 : vector<1x1xf32> to vector<1x1xf32>
    %67 = vector.broadcast %66 : vector<1x1xf32> to vector<8x128xf32>
    %68 = arith.select %59, %67, %65 : vector<8x128xi1>, vector<8x128xf32>
    %69 = vector.shape_cast %40 : vector<1x1xf32> to vector<1x1xf32>
    %70 = vector.broadcast %69 : vector<1x1xf32> to vector<8x128xf32>
    %71 = arith.select %57, %70, %68 : vector<8x128xi1>, vector<8x128xf32>
    %c0_i32_15 = arith.constant 0 : i32
    %72 = vector.broadcast %c0_i32_15 : i32 to vector<8x128xi32>
    %73 = arith.cmpi eq, %55, %72 : vector<8x128xi32>
    %cst_16 = arith.constant 0.000000e+00 : f32
    %74 = vector.broadcast %cst_16 : f32 to vector<8x128xf32>
    %75 = arith.select %73, %71, %74 : vector<8x128xi1>, vector<8x128xf32>
    %c0_17 = arith.constant 0 : index
    %c0_18 = arith.constant 0 : index
    %76 = vector.load %arg2[%c0_17, %c0_18] : memref<8x128xf32, #tpu.memory_space<vmem>>, vector<8x128xf32>
    tpu.vector_store %arg2[%c0_17, %c0_18], %75 {strides = array<i32>} : memref<8x128xf32, #tpu.memory_space<vmem>>, vector<8x128xf32>,
    return
  }
  func.func @transform_0(%arg0: i32) -> (i32, i32) {
    %c0_i32 = arith.constant 0 : i32
    %c0_i32_0 = arith.constant 0 : i32
    return %arg0, %c0_i32 : i32, i32
  }
  func.func @transform_1(%arg0: i32) -> (i32, i32) {
    %c0_i32 = arith.constant 0 : i32
    %c0_i32_0 = arith.constant 0 : i32
    return %arg0, %c0_i32 : i32, i32
  }
}

</mosaic_0001>

<bundles_post_ra>
// kernel: tpu_custom_call.1
= control target key start
LH: loop header
LB: loop body
LE: loop exit
PB: predicated region body
PF: predicated region fallthrough
CT: control target
= control target key end

     0   :  { %6 = vsyncpa [#allocation3], 0  ;;  %s222_s0 = inlined_call_operand.hbm [shape: f32[8,32], index: 0, kind: input, shape index: {}]   ;;  %s223_s1 = inlined_call_operand.hbm [shape: f32[8,128], index: 1, kind: output, shape index: {}]  }
   0x1   :  { %7 = vsyncpa [#allocation4], 0  ;;  %s185_s6 = smov [#allocation2]   ;;  %s137_s10 = scalar_lea.hbm %s222_s0, 128 }
   0x2   :  { %s14_s7 = sshll.u32 %s185_s6, 4  ;;  %p138_p0 = scmp.ne.s32.totalorder %s222_s0, %s137_s10  ;;  %s15_s7 = int_to_ptr.vmem [resolvable:$true] %s14_s7 }
   0x3   :  { %p141_p1 = scmp.lt.u32.totalorder %s137_s10, %s222_s0 }
   0x5   :  { %p143_p2 = pnand %p141_p1, %p138_p0 }
   0x7   :  { %146 = shalt.err (!%p143_p2)
}
   0x8   :  { %s147_s15 = scalar_lea.vmem %s15_s7, 128  ;;  %p152_p4 = scmp.lt.s32.totalorder %s15_s7, %s15_s7 }
   0x9   :  { %p148_p3 = scmp.ne.s32.totalorder %s15_s7, %s147_s15  ;;  %p153_p5 = scmp.lt.s32.totalorder %s147_s15, %s147_s15 }
   0xb   :  { %p154_p6 = por %p153_p5, %p152_p4 }
   0xd   :  { %p155_p7 = pnand %p154_p6, %p148_p3 }
   0xf   :  { %158 = shalt.err (!%p155_p7)
}
  0x10   :  { %17 = dma.hbm_to_vmem [thread:$0]  %s222_s0, 128, %s15_s7, [#allocation3]  }
  0x11   :  { %181 = dma.done.wait [#allocation3], 128  }
  0x12   :  { %182 = vsyncadd [#allocation3], 4294967168  ;;  %vm28_vm0 = vcmask 261120   ;;  %v21_v0 = vld [vmem:[#allocation2] sm:$0xff]  ;;  %v186_v17 = vmov 0.0   ;;  %vm59_vm4 = vcmask 7168   ;;  %v23_v48 = vlaneseq }
  0x13   :  { %v29_v1 = vsel %vm28_vm0, %v21_v0, -inf  ;;  %v32_v9 = vsel %vm28_vm0, %v21_v0, inf  ;;  %s187_s20 = smov [#allocation5]  }
  0x14   :  { %30 = vmax.xlane.f32.xlu0 %v29_v1  ;;  %v93_v49 = vand.u32 127, %v23_v48  ;;  %v24_v50 = vshrl.u32 %v23_v48, 7  ;;  %s112_s21 = sshll.u32 %s187_s20, 4  ;;  %s113_s21 = int_to_ptr.vmem [resolvable:$true] %s112_s21 }
  0x15   :  { %s159_s22 = scalar_lea.vmem %s113_s21, 128  ;;  %p164_p9 = scmp.lt.s32.totalorder %s113_s21, %s113_s21 }
  0x16   :  { %vm96_vm5 = vcmp.eq.s32.totalorder %v93_v49, 2  ;;  %vm95_vm6 = vcmp.eq.s32.totalorder %v93_v49, 1  ;;  %vm94_vm7 = vcmp.eq.s32.totalorder %v93_v49, 0  ;;  %vm103_vm8 = vcmp.eq.s32.totalorder %v24_v50, 0  ;;  %p160_p8 = scmp.ne.s32.totalorder %s113_s21, %s159_s22  ;;  %p165_p10 = scmp.lt.s32.totalorder %s159_s22, %s159_s22 }
  0x18   :  { %p166_p11 = por %p165_p10, %p164_p9 }
  0x1a   :  { %p167_p12 = pnand %p166_p11, %p160_p8 }
  0xa1   :  { %v31_v2 = vpop.xlane.xlu0 %30 }
  0xa2   :  { %v41_v3 = vsub.f32 %v21_v0, %v31_v2  ;;  %vm35_vm2 = vcmp.ne.f32.partialorder %v31_v2, 0.0 }
  0xa4   :  { %v42_v4 = vmul.f32 1.442695, %v41_v3 }
  0xa6   :  { %131 = vpow2.f32 %v42_v4 }
  0xb0   :  { %v132_v5 = vpop.eup %131 }
  0xb1   :  { %v44_v6 = vsel %vm28_vm0, %v132_v5, 0.0  ;;  %v47_v7 = vmul.f32 %v132_v5, %v41_v3 }
  0xb2   :  { %45 = vadd.xlane.f32.xlu0 %v44_v6 }
  0xb3   :  { %v48_v8 = vsel %vm28_vm0, %v47_v7, 0.0 }
  0xb4   :  { %49 = vadd.xlane.f32.xlu1 %v48_v8 }
  0xb8   :  { %33 = vmin.xlane.f32.xlu1 %v32_v9 }
 0x13f   :  { %v46_v10 = vpop.xlane.xlu0 %45 }
 0x140   :  { %133 = vrcp.f32 %v46_v10 }
 0x141   :  { %135 = vlog2.f32 %v46_v10  ;;  %v50_v11 = vpop.xlane.xlu1 %49 }
 0x145   :  { %v34_v12 = vpop.xlane.xlu1 %33 }
 0x146   :  { %vm36_vm1 = vcmp.ne.f32.partialorder %v34_v12, 0.0 }
 0x147   :  { %vm37_vm3 = vmor %vm35_vm2, %vm36_vm1 }
 0x148   :  { %v121_v18 = vsel %vm37_vm3, 1.0, %v186_v17 }
 0x149   :  { %v70_v21 = vsub.f32 1.0, %v121_v18  ;;  %v82_v26 = vsel %vm59_vm4, %v121_v18, 0.0 }
 0x14a   :  { %v134_v13 = vpop.eup %133 }
 0x14b   :  { %v136_v14 = vpop.eup %135  ;;  %v52_v15 = vmul.f32 %v134_v13, %v50_v11 }
 0x14c   :  { %v54_v16 = vmul.f32 0.6931472, %v136_v14 }
 0x14e   :  { %v55_v19 = vsub.f32 %v52_v15, %v54_v16 }
 0x150   :  { %v56_v20 = vmul.f32 1.442695, %v55_v19 }
 0x152   :  { %v71_v22 = vmul.f32 %v70_v21, %v56_v20  ;;  %v58_v23 = vmul.f32 %v121_v18, %v56_v20 }
 0x154   :  { %v72_v24 = vsel %vm59_vm4, %v71_v22, 0.0  ;;  %v60_v25 = vsel %vm59_vm4, %v58_v23, 0.0 }
 0x155   :  { %73 = vadd.xlane.f32.xlu1 %v72_v24  ;;  %61 = vadd.xlane.f32.xlu0 %v60_v25 }
 0x159   :  { %83 = vadd.xlane.f32.xlu0 %v82_v26 }
 0x1e2   :  { %v74_v27 = vpop.xlane.xlu1 %73  ;;  %v62_v28 = vpop.xlane.xlu0 %61 }
 0x1e3   :  { %v75_v29 = vrot.slane %v74_v27, 4  ;;  %v63_v30 = vrot.slane %v62_v28, 4 }
 0x1e5   :  { %v76_v31 = vadd.f32 %v75_v29, %v74_v27  ;;  %v64_v32 = vadd.f32 %v63_v30, %v62_v28 }
 0x1e6   :  { %v84_v33 = vpop.xlane.xlu0 %83 }
 0x1e7   :  { %v77_v34 = vrot.slane %v76_v31, 2  ;;  %v65_v35 = vrot.slane %v64_v32, 2  ;;  %v85_v36 = vrot.slane %v84_v33, 4 }
 0x1e9   :  { %v78_v37 = vadd.f32 %v77_v34, %v76_v31  ;;  %v86_v38 = vadd.f32 %v85_v36, %v84_v33  ;;  %v66_v39 = vadd.f32 %v65_v35, %v64_v32 }
 0x1eb   :  { %v87_v40 = vrot.slane %v86_v38, 2  ;;  %v67_v41 = vrot.slane %v66_v39, 1  ;;  %v79_v42 = vrot.slane %v78_v37, 1 }
 0x1ed   :  { %v88_v43 = vadd.f32 %v87_v40, %v86_v38  ;;  %v68_v44 = vadd.f32 %v67_v41, %v66_v39  ;;  %v80_v45 = vadd.f32 %v79_v42, %v78_v37 }
 0x1ef   :  { %122 = vpush %v68_v44  ;;  %v89_v46 = vrot.slane %v88_v43, 1 }
 0x1f0   :  { %124 = vpush %v80_v45 }
 0x1f1   :  { %v90_v47 = vadd.f32 %v89_v46, %v88_v43 }
 0x1f3   :  { %126 = vpush %v90_v47 }
 0x220   :  { %s123_s0 = spop %122 }
 0x221   :  { %s125_s18 = spop %124  ;;  %v101_v54 = vstv %s123_s0 }
 0x222   :  { %v99_v52 = vstv %s125_s18 }
 0x224   :  { %s127_s19 = spop %126 }
 0x225   :  { %v97_v51 = vstv %s127_s19 }
 0x226   :  { %v98_v53 = vsel %vm96_vm5, %v97_v51, 0.0 }
 0x227   :  { %v100_v55 = vsel %vm95_vm6, %v99_v52, %v98_v53 }
 0x228   :  { %v102_v56 = vsel %vm94_vm7, %v101_v54, %v100_v55 }
 0x229   :  { %v104_v57 = vsel %vm103_vm8, %v102_v56, 0.0 }
 0x22a   :  { %105 = vst [vmem:[#allocation5] sm:$0xff] %v104_v57 }
 0x22b   :  { %170 = shalt.err (!%p167_p12)
}
 0x22c   :  { %s171_s25 = scalar_lea.hbm %s223_s1, 128 }
 0x22d   :  { %p172_p13 = scmp.ne.s32.totalorder %s223_s1, %s171_s25  ;;  %p175_p0 = scmp.lt.u32.totalorder %s171_s25, %s223_s1 }
 0x22f   :  { %p177_p1 = pnand %p175_p0, %p172_p13 }
 0x231   :  { %180 = shalt.err (!%p177_p1)
}
 0x232   :  { %115 = dma.vmem_to_hbm [thread:$0]  %s113_s21, 128, %s223_s1, [#allocation4]  }
 0x233   :  { %183 = dma.done.wait [#allocation4], 128  }
 0x234   :  { %184 = vsyncadd [#allocation4], 4294967168 }
 0x235   :  { %119 = vsyncpa [#allocation3], 1 }
 0x236   :  { %120 = vsyncpa [#allocation4], 1 }

</bundles_post_ra>
